<compile_context>
chip_gen: v7x
topology: tpu7x:2x2x1
jax: 0.10.0
libtpu: 0.0.40
codegen_flags: <defaults>
</compile_context>

<pallas_src>
import jax
import jax.numpy as jnp
from jax.experimental import pallas as pl
from jax.experimental.pallas import tpu as pltpu


def _pick_num_dma_chunks(weight) -> int:
    """Choose how many concurrent HBM->HBM DMAs to issue.

    Tiny tensors (< 1 MiB): a single descriptor — extra descriptors (~600
    cycles each) would only add overhead.  Larger tensors: enough chunks that
    each DMA moves >= ~512 KiB, capped at 8 concurrent streams (v7x headroom;
    v5e/v6e saturate earlier but the extra descriptors are negligible at
    MB+ sizes) and at the number of rows (chunks are contiguous row ranges).
    """
    nbytes = int(weight.size) * weight.dtype.itemsize
    if nbytes < (1 << 20):
        return 1
    rows = weight.shape[0] if weight.ndim >= 1 else 1
    k = min(8, rows, max(1, nbytes // (512 * 1024)))
    return max(1, int(k))


def _row_chunks(rows: int, k: int):
    """Nearly-even static (start, size) row ranges covering [0, rows)."""
    base, rem = divmod(rows, k)
    chunks, start = [], 0
    for i in range(k):
        size = base + (1 if i < rem else 0)
        if size > 0:
            chunks.append((start, size))
        start += size
    return chunks


def _make_copy_kernel(chunks):
    """Build the kernel body + scratch shapes for the given static chunking."""
    k = len(chunks)
    if k == 1:
        # Single blocking HBM->HBM DMA; no semaphore scratch needed.
        def kernel(w_hbm, o_hbm):
            pltpu.sync_copy(w_hbm, o_hbm)

        return kernel, ()

    # K concurrent DMAs over contiguous row chunks (static starts/sizes),
    # all started before any wait so they overlap in the DMA engines.
    def kernel(w_hbm, o_hbm, sem):
        descs = []
        for i, (start, size) in enumerate(chunks):
            cp = pltpu.make_async_copy(
                w_hbm.at[pl.ds(start, size)],
                o_hbm.at[pl.ds(start, size)],
                sem.at[i],
            )
            cp.start()
            descs.append(cp)
        for cp in descs:
            cp.wait()

    return kernel, (pltpu.SemaphoreType.DMA((k,)),)


def copy_x_forward(x, weight):
    """Reproduces copy_x.forward: returns (a materialized copy of) the weight.

    The input is ignored, exactly like the PyTorch module.  The copy is done
    entirely in HBM via direct DMA(s) — no grid, no VMEM staging buffers, no
    lane-width constraints.
    """
    del x  # forward() ignores its input

    nbytes = int(weight.size) * weight.dtype.itemsize
    k = _pick_num_dma_chunks(weight)
    rows = weight.shape[0] if weight.ndim >= 1 else 1
    chunks = _row_chunks(rows, k)
    kernel, scratch = _make_copy_kernel(chunks)

    return pl.pallas_call(
        kernel,
        out_shape=jax.ShapeDtypeStruct(weight.shape, weight.dtype),
        in_specs=[pl.BlockSpec(memory_space=pl.ANY)],
        out_specs=pl.BlockSpec(memory_space=pl.ANY),
        scratch_shapes=list(scratch),
        cost_estimate=pl.CostEstimate(
            flops=0, transcendentals=0, bytes_accessed=2 * nbytes
        ),
    )(weight)


if __name__ == "__main__":
    key = jax.random.PRNGKey(0)
    k_w, k_x = jax.random.split(key)

    in_features, out_features = 8, 32
    batch = 2

    # Deterministic parameter init (synthetic; matches nn.Parameter shape
    # (in_features, out_features)).
    weight = jax.random.normal(k_w, (in_features, out_features), dtype=jnp.float32)
    # Input is ignored by forward(), but construct it anyway for fidelity.
    x = jax.random.normal(k_x, (batch, in_features), dtype=jnp.float32)

    out = copy_x_forward(x, weight)
    out = jax.block_until_ready(out)

    assert out.shape == (in_features, out_features)
    assert jnp.allclose(out, weight), "kernel output does not match weight"
    print("KERNEL_OK")
</pallas_src>

<mosaic_0001>
module attributes {stable_mosaic.version = 11 : i64} {
  func.func @kernel(%arg0: memref<8x32xf32, #tpu.memory_space<any>>, %arg1: memref<8x32xf32, #tpu.memory_space<any>>) attributes {dimension_semantics = [], scalar_prefetch = 0 : i64, scratch_operands = 0 : i64, tpu.core_type = #tpu.core_type<tc>} {
    "tpu.region"() ({
      %0 = tpu.sem_alloc : memref<!tpu.dma_semaphore, #tpu.memory_space<semaphore_mem>>
      tpu.enqueue_dma source(%arg0 : memref<8x32xf32, #tpu.memory_space<any>>) target(%arg1 : memref<8x32xf32, #tpu.memory_space<any>>) target_semaphore(%0 : memref<!tpu.dma_semaphore, #tpu.memory_space<semaphore_mem>>)
      tpu.wait_dma2 semaphore(%0 : memref<!tpu.dma_semaphore, #tpu.memory_space<semaphore_mem>>) src(%arg0 : memref<8x32xf32, #tpu.memory_space<any>>) dst(%arg1 : memref<8x32xf32, #tpu.memory_space<any>>)
      tpu.yield
    }) : () -> ()
    return
  }
}

</mosaic_0001>

<bundles_post_ra>
// kernel: tpu_custom_call.1
= control target key start
LH: loop header
LB: loop body
LE: loop exit
PB: predicated region body
PF: predicated region fallthrough
CT: control target
= control target key end

     0   :  { %s27_s6 = smov [#allocation2]   ;;  %s28_s7 = smov [#allocation3]   ;;  %s46_s0 = inlined_call_operand.hbm [shape: f32[8,32], index: 0, kind: input, shape index: {}]   ;;  %s47_s1 = inlined_call_operand.hbm [shape: f32[8,32], index: 1, kind: output, shape index: {}]  }
   0x1   :  { %s29_s8 = smov 0  }
   0x2   :  { %18 = dma.general %s46_s0, 128, %s47_s1, %s27_s6, %s28_s7, [#allocation4], %s29_s8, 0  }
   0x3   :  { %25 = dma.done.wait [#allocation2], 128 }
   0x4   :  { %26 = vsyncadd [#allocation2], 4294967168 }

</bundles_post_ra>
